<compile_context>
chip_gen: v5e
topology: v5e:2x2
jax: 0.10.0
libtpu: 0.0.40
codegen_flags: <defaults>
</compile_context>

<pallas_src>
import jax
import jax.numpy as jnp
import numpy as np
from jax.experimental import pallas as pl
from jax.experimental.pallas import tpu as pltpu


def fold_bn(gamma, beta, mean, var, eps=1e-5):
    """Eval-mode BatchNorm folded to per-channel (scale, bias)."""
    scale = gamma / jnp.sqrt(var + eps)
    bias = beta - mean * scale
    return scale, bias


def _tap_masks(H, W, KH, KW):
    """(KH*KW, H*W) f32 validity masks for the flat-pixel tap shifts of a SAME conv."""
    ph, pw = (KH - 1) // 2, (KW - 1) // 2
    masks = np.zeros((KH * KW, H, W), np.float32)
    hh = np.arange(H)
    ww = np.arange(W)
    for t in range(KH * KW):
        dh, dw = divmod(t, KW)
        h_ok = (hh + dh - ph >= 0) & (hh + dh - ph < H)
        w_ok = (ww + dw - pw >= 0) & (ww + dw - pw < W)
        masks[t] = (h_ok[:, None] & w_ok[None, :]).astype(np.float32)
    return masks.reshape(KH * KW, H * W)


def _make_xblock_kernel(H, W, KH, KW):
    """Fused (conv1+BN1+ReLU) -> (conv2+BN2) -> (+residual) -> ReLU body, one image."""
    HW = H * W
    ph, pw = (KH - 1) // 2, (KW - 1) // 2

    def kernel(x_ref, w1_ref, b1_ref, w2_ref, b2_ref, masks_ref, o_ref):
        x = x_ref[...]                      # (Cin, HW) f32, lane-dense
        masks = masks_ref[...]              # (KH*KW, HW) f32, resident across grid

        def conv_taps(src, w_ref):
            # SAME KxK conv as KH*KW shifted+masked per-tap MXU matmuls, accumulated
            # in f32. pltpu.roll is a lane rotation (XLU); wrapped lanes coincide with
            # mask==0 positions, so zero-padding semantics hold (see header note).
            acc = None
            for t in range(KH * KW):
                dh, dw = divmod(t, KW)
                off = (dh - ph) * W + (dw - pw)
                tap = src if off == 0 else pltpu.roll(src, (-off) % HW, 1)
                if not (dh == ph and dw == pw):          # center-tap mask is all ones
                    tap = tap * masks[t:t + 1, :]
                part = jnp.dot(w_ref[t], tap, preferred_element_type=jnp.float32)
                acc = part if acc is None else acc + part
            return acc

        # Layer 1: conv + folded-BN1 bias + ReLU (scale already folded into w1).
        h1 = jnp.maximum(conv_taps(x, w1_ref) + b1_ref[...], 0.0)       # (Cmid, HW)
        # Layer 2: conv + folded-BN2 bias, residual add, final ReLU (lane-dense store).
        y = conv_taps(h1, w2_ref) + b2_ref[...] + x                     # (Cin, HW)
        o_ref[...] = jnp.maximum(y, 0.0)

    return kernel


@jax.jit
def xblock_forward(x_nchw, params):
    """XBlock forward. Input is NCHW (PyTorch convention). BN is eval-mode (folded)."""
    N, Cin, H, W = x_nchw.shape
    KH, KW, _, Cmid = params["w1"].shape
    HW = H * W

    s1, b1 = fold_bn(params["g1"], params["be1"], params["m1"], params["v1"])
    s2, b2 = fold_bn(params["g2"], params["be2"], params["m2"], params["v2"])

    # Free reshape: NCHW -> (N, Cin, H*W). Lane axis H*W is a multiple of 128.
    x_r = x_nchw.reshape(N, Cin, HW)

    # Per-tap weights with BN scale folded in: (tap, Cout, Cin_src).
    w1_taps = jnp.transpose(params["w1"] * s1[None, None, None, :],
                            (0, 1, 3, 2)).reshape(KH * KW, Cmid, Cin)
    w2_taps = jnp.transpose(params["w2"] * s2[None, None, None, :],
                            (0, 1, 3, 2)).reshape(KH * KW, Cin, Cmid)
    b1c = b1.reshape(Cmid, 1).astype(jnp.float32)
    b2c = b2.reshape(Cin, 1).astype(jnp.float32)

    # Boundary masks: tiny (KH*KW, HW) jit-constant, DMA'd once and resident.
    masks = jnp.asarray(_tap_masks(H, W, KH, KW))

    kernel = _make_xblock_kernel(H, W, KH, KW)

    def resident(shape):   # whole array, same block every grid step -> stays in VMEM
        return pl.BlockSpec(shape, lambda n: (0,) * len(shape))

    out_r = pl.pallas_call(
        kernel,
        out_shape=jax.ShapeDtypeStruct((N, Cin, HW), jnp.float32),
        grid=(N,),
        in_specs=[
            pl.BlockSpec((None, Cin, HW), lambda n: (n, 0, 0)),   # x: one image / step
            resident((KH * KW, Cmid, Cin)),                       # w1 (scale-folded)
            resident((Cmid, 1)),                                  # bn1 bias
            resident((KH * KW, Cin, Cmid)),                       # w2 (scale-folded)
            resident((Cin, 1)),                                   # bn2 bias
            resident((KH * KW, HW)),                              # boundary masks
        ],
        out_specs=pl.BlockSpec((None, Cin, HW), lambda n: (n, 0, 0)),
        compiler_params=pltpu.CompilerParams(
            dimension_semantics=("parallel",)),                   # shard batch on v7x
    )(x_r, w1_taps, b1c, w2_taps, b2c, masks)

    return out_r.reshape(N, Cin, H, W)


def xblock_reference(x_nchw, params):
    """Pure-JAX reference (lax.conv) for correctness checking."""
    x = jnp.transpose(x_nchw, (0, 2, 3, 1))

    def conv(h, w):
        return jax.lax.conv_general_dilated(
            h, w, window_strides=(1, 1), padding="SAME",
            dimension_numbers=("NHWC", "HWIO", "NHWC"))

    s1, b1 = fold_bn(params["g1"], params["be1"], params["m1"], params["v1"])
    h1 = jnp.maximum(conv(x, params["w1"]) * s1 + b1, 0.0)
    s2, b2 = fold_bn(params["g2"], params["be2"], params["m2"], params["v2"])
    h2 = conv(h1, params["w2"]) * s2 + b2
    out = jnp.maximum(h2 + x, 0.0)
    return jnp.transpose(out, (0, 3, 1, 2))


if __name__ == "__main__":
    # XBlock(in_channels=4, out_channels_list=[8, 4], kernel_sizes_list=[3, 3],
    #        stride=1, downsample=None) -> residual add is active.
    N, Cin, H, W = 2, 4, 16, 16
    Cmid = 8

    key = jax.random.PRNGKey(0)
    ks = jax.random.split(key, 12)

    x = jax.random.normal(ks[0], (N, Cin, H, W), dtype=jnp.float32)  # NCHW input

    params = {
        # conv weights in HWIO layout
        "w1": 0.2 * jax.random.normal(ks[1], (3, 3, Cin, Cmid), dtype=jnp.float32),
        "w2": 0.2 * jax.random.normal(ks[2], (3, 3, Cmid, Cin), dtype=jnp.float32),
        # BatchNorm1 (eval-mode running stats)
        "g1": 1.0 + 0.1 * jax.random.normal(ks[3], (Cmid,), dtype=jnp.float32),
        "be1": 0.1 * jax.random.normal(ks[4], (Cmid,), dtype=jnp.float32),
        "m1": 0.1 * jax.random.normal(ks[5], (Cmid,), dtype=jnp.float32),
        "v1": jnp.abs(jax.random.normal(ks[6], (Cmid,), dtype=jnp.float32)) + 0.5,
        # BatchNorm2
        "g2": 1.0 + 0.1 * jax.random.normal(ks[7], (Cin,), dtype=jnp.float32),
        "be2": 0.1 * jax.random.normal(ks[8], (Cin,), dtype=jnp.float32),
        "m2": 0.1 * jax.random.normal(ks[9], (Cin,), dtype=jnp.float32),
        "v2": jnp.abs(jax.random.normal(ks[10], (Cin,), dtype=jnp.float32)) + 0.5,
    }

    out = jax.block_until_ready(xblock_forward(x, params))
    ref = jax.block_until_ready(xblock_reference(x, params))
    np.testing.assert_allclose(np.asarray(out), np.asarray(ref), rtol=1e-4, atol=1e-4)

    assert out.shape == (N, Cin, H, W)
    print("KERNEL_OK")
</pallas_src>

<mosaic_0001>
module attributes {stable_mosaic.version = 11 : i64} {
  func.func @kernel(%arg0: i32, %arg1: memref<1x4x256xf32, #tpu.memory_space<vmem>>, %arg2: memref<9x8x4xf32, #tpu.memory_space<vmem>>, %arg3: memref<8x1xf32, #tpu.memory_space<vmem>>, %arg4: memref<9x4x8xf32, #tpu.memory_space<vmem>>, %arg5: memref<4x1xf32, #tpu.memory_space<vmem>>, %arg6: memref<9x256xf32, #tpu.memory_space<vmem>>, %arg7: memref<1x4x256xf32, #tpu.memory_space<vmem>>) attributes {dimension_semantics = [#tpu.dimension_semantics<parallel>], iteration_bounds = array<i64: 2>, scalar_prefetch = 0 : i64, scratch_operands = 0 : i64, tpu.core_type = #tpu.core_type<tc>, window_params = [{transform_indices = @transform_0, window_bounds = array<i64: 1, 4, 256>}, {pipeline_mode = #tpu.pipeline_mode<synchronous>, transform_indices = @transform_1, window_bounds = array<i64: 9, 8, 4>}, {pipeline_mode = #tpu.pipeline_mode<synchronous>, transform_indices = @transform_2, window_bounds = array<i64: 8, 1>}, {pipeline_mode = #tpu.pipeline_mode<synchronous>, transform_indices = @transform_3, window_bounds = array<i64: 9, 4, 8>}, {pipeline_mode = #tpu.pipeline_mode<synchronous>, transform_indices = @transform_4, window_bounds = array<i64: 4, 1>}, {pipeline_mode = #tpu.pipeline_mode<synchronous>, transform_indices = @transform_5, window_bounds = array<i64: 9, 256>}, {transform_indices = @transform_6, window_bounds = array<i64: 1, 4, 256>}]} {
    %c0 = arith.constant 0 : index
    %c0_0 = arith.constant 0 : index
    %c0_1 = arith.constant 0 : index
    %0 = vector.load %arg1[%c0, %c0_0, %c0_1] : memref<1x4x256xf32, #tpu.memory_space<vmem>>, vector<1x4x256xf32>
    %1 = vector.shape_cast %0 : vector<1x4x256xf32> to vector<4x256xf32>
    %c0_2 = arith.constant 0 : index
    %c0_3 = arith.constant 0 : index
    %2 = vector.load %arg6[%c0_2, %c0_3] : memref<9x256xf32, #tpu.memory_space<vmem>>, vector<9x256xf32>
    %c17_i32 = arith.constant 17 : i32
    %3 = tpu.dynamic_rotate %1 by %c17_i32 dim 1 : vector<4x256xf32>, i32 -> vector<4x256xf32>
    %4 = vector.extract_strided_slice %2 {offsets = [0, 0], sizes = [1, 256], strides = [1, 1]} : vector<9x256xf32> to vector<1x256xf32>
    %5 = vector.broadcast %4 : vector<1x256xf32> to vector<4x256xf32>
    %6 = arith.mulf %3, %5 : vector<4x256xf32>
    %c0_4 = arith.constant 0 : index
    %c0_5 = arith.constant 0 : index
    %c0_6 = arith.constant 0 : index
    %7 = vector.load %arg2[%c0_4, %c0_5, %c0_6] : memref<9x8x4xf32, #tpu.memory_space<vmem>>, vector<1x8x4xf32>
    %8 = vector.shape_cast %7 : vector<1x8x4xf32> to vector<8x4xf32>
    %cst = arith.constant dense<0.000000e+00> : vector<8x256xf32>
    %9 = tpu.matmul %8, %6, %cst {dimension_numbers = #tpu.dot_dimension_numbers<[1], [0], [0], [1], [0, 0, 1, 1], [], []>} : vector<8x4xf32>, vector<4x256xf32>, vector<8x256xf32> -> vector<8x256xf32>
    %c16_i32 = arith.constant 16 : i32
    %10 = tpu.dynamic_rotate %1 by %c16_i32 dim 1 : vector<4x256xf32>, i32 -> vector<4x256xf32>
    %11 = vector.extract_strided_slice %2 {offsets = [1, 0], sizes = [1, 256], strides = [1, 1]} : vector<9x256xf32> to vector<1x256xf32>
    %12 = vector.broadcast %11 : vector<1x256xf32> to vector<4x256xf32>
    %13 = arith.mulf %10, %12 : vector<4x256xf32>
    %c1 = arith.constant 1 : index
    %c0_7 = arith.constant 0 : index
    %c0_8 = arith.constant 0 : index
    %14 = vector.load %arg2[%c1, %c0_7, %c0_8] : memref<9x8x4xf32, #tpu.memory_space<vmem>>, vector<1x8x4xf32>
    %15 = vector.shape_cast %14 : vector<1x8x4xf32> to vector<8x4xf32>
    %cst_9 = arith.constant dense<0.000000e+00> : vector<8x256xf32>
    %16 = tpu.matmul %15, %13, %cst_9 {dimension_numbers = #tpu.dot_dimension_numbers<[1], [0], [0], [1], [0, 0, 1, 1], [], []>} : vector<8x4xf32>, vector<4x256xf32>, vector<8x256xf32> -> vector<8x256xf32>
    %17 = arith.addf %9, %16 : vector<8x256xf32>
    %c15_i32 = arith.constant 15 : i32
    %18 = tpu.dynamic_rotate %1 by %c15_i32 dim 1 : vector<4x256xf32>, i32 -> vector<4x256xf32>
    %19 = vector.extract_strided_slice %2 {offsets = [2, 0], sizes = [1, 256], strides = [1, 1]} : vector<9x256xf32> to vector<1x256xf32>
    %20 = vector.broadcast %19 : vector<1x256xf32> to vector<4x256xf32>
    %21 = arith.mulf %18, %20 : vector<4x256xf32>
    %c2 = arith.constant 2 : index
    %c0_10 = arith.constant 0 : index
    %c0_11 = arith.constant 0 : index
    %22 = vector.load %arg2[%c2, %c0_10, %c0_11] : memref<9x8x4xf32, #tpu.memory_space<vmem>>, vector<1x8x4xf32>
    %23 = vector.shape_cast %22 : vector<1x8x4xf32> to vector<8x4xf32>
    %cst_12 = arith.constant dense<0.000000e+00> : vector<8x256xf32>
    %24 = tpu.matmul %23, %21, %cst_12 {dimension_numbers = #tpu.dot_dimension_numbers<[1], [0], [0], [1], [0, 0, 1, 1], [], []>} : vector<8x4xf32>, vector<4x256xf32>, vector<8x256xf32> -> vector<8x256xf32>
    %25 = arith.addf %17, %24 : vector<8x256xf32>
    %c1_i32 = arith.constant 1 : i32
    %26 = tpu.dynamic_rotate %1 by %c1_i32 dim 1 : vector<4x256xf32>, i32 -> vector<4x256xf32>
    %27 = vector.extract_strided_slice %2 {offsets = [3, 0], sizes = [1, 256], strides = [1, 1]} : vector<9x256xf32> to vector<1x256xf32>
    %28 = vector.broadcast %27 : vector<1x256xf32> to vector<4x256xf32>
    %29 = arith.mulf %26, %28 : vector<4x256xf32>
    %c3 = arith.constant 3 : index
    %c0_13 = arith.constant 0 : index
    %c0_14 = arith.constant 0 : index
    %30 = vector.load %arg2[%c3, %c0_13, %c0_14] : memref<9x8x4xf32, #tpu.memory_space<vmem>>, vector<1x8x4xf32>
    %31 = vector.shape_cast %30 : vector<1x8x4xf32> to vector<8x4xf32>
    %cst_15 = arith.constant dense<0.000000e+00> : vector<8x256xf32>
    %32 = tpu.matmul %31, %29, %cst_15 {dimension_numbers = #tpu.dot_dimension_numbers<[1], [0], [0], [1], [0, 0, 1, 1], [], []>} : vector<8x4xf32>, vector<4x256xf32>, vector<8x256xf32> -> vector<8x256xf32>
    %33 = arith.addf %25, %32 : vector<8x256xf32>
    %c4 = arith.constant 4 : index
    %c0_16 = arith.constant 0 : index
    %c0_17 = arith.constant 0 : index
    %34 = vector.load %arg2[%c4, %c0_16, %c0_17] : memref<9x8x4xf32, #tpu.memory_space<vmem>>, vector<1x8x4xf32>
    %35 = vector.shape_cast %34 : vector<1x8x4xf32> to vector<8x4xf32>
    %cst_18 = arith.constant dense<0.000000e+00> : vector<8x256xf32>
    %36 = tpu.matmul %35, %1, %cst_18 {dimension_numbers = #tpu.dot_dimension_numbers<[1], [0], [0], [1], [0, 0, 1, 1], [], []>} : vector<8x4xf32>, vector<4x256xf32>, vector<8x256xf32> -> vector<8x256xf32>
    %37 = arith.addf %33, %36 : vector<8x256xf32>
    %c255_i32 = arith.constant 255 : i32
    %38 = tpu.dynamic_rotate %1 by %c255_i32 dim 1 : vector<4x256xf32>, i32 -> vector<4x256xf32>
    %39 = vector.extract_strided_slice %2 {offsets = [5, 0], sizes = [1, 256], strides = [1, 1]} : vector<9x256xf32> to vector<1x256xf32>
    %40 = vector.broadcast %39 : vector<1x256xf32> to vector<4x256xf32>
    %41 = arith.mulf %38, %40 : vector<4x256xf32>
    %c5 = arith.constant 5 : index
    %c0_19 = arith.constant 0 : index
    %c0_20 = arith.constant 0 : index
    %42 = vector.load %arg2[%c5, %c0_19, %c0_20] : memref<9x8x4xf32, #tpu.memory_space<vmem>>, vector<1x8x4xf32>
    %43 = vector.shape_cast %42 : vector<1x8x4xf32> to vector<8x4xf32>
    %cst_21 = arith.constant dense<0.000000e+00> : vector<8x256xf32>
    %44 = tpu.matmul %43, %41, %cst_21 {dimension_numbers = #tpu.dot_dimension_numbers<[1], [0], [0], [1], [0, 0, 1, 1], [], []>} : vector<8x4xf32>, vector<4x256xf32>, vector<8x256xf32> -> vector<8x256xf32>
    %45 = arith.addf %37, %44 : vector<8x256xf32>
    %c241_i32 = arith.constant 241 : i32
    %46 = tpu.dynamic_rotate %1 by %c241_i32 dim 1 : vector<4x256xf32>, i32 -> vector<4x256xf32>
    %47 = vector.extract_strided_slice %2 {offsets = [6, 0], sizes = [1, 256], strides = [1, 1]} : vector<9x256xf32> to vector<1x256xf32>
    %48 = vector.broadcast %47 : vector<1x256xf32> to vector<4x256xf32>
    %49 = arith.mulf %46, %48 : vector<4x256xf32>
    %c6 = arith.constant 6 : index
    %c0_22 = arith.constant 0 : index
    %c0_23 = arith.constant 0 : index
    %50 = vector.load %arg2[%c6, %c0_22, %c0_23] : memref<9x8x4xf32, #tpu.memory_space<vmem>>, vector<1x8x4xf32>
    %51 = vector.shape_cast %50 : vector<1x8x4xf32> to vector<8x4xf32>
    %cst_24 = arith.constant dense<0.000000e+00> : vector<8x256xf32>
    %52 = tpu.matmul %51, %49, %cst_24 {dimension_numbers = #tpu.dot_dimension_numbers<[1], [0], [0], [1], [0, 0, 1, 1], [], []>} : vector<8x4xf32>, vector<4x256xf32>, vector<8x256xf32> -> vector<8x256xf32>
    %53 = arith.addf %45, %52 : vector<8x256xf32>
    %c240_i32 = arith.constant 240 : i32
    %54 = tpu.dynamic_rotate %1 by %c240_i32 dim 1 : vector<4x256xf32>, i32 -> vector<4x256xf32>
    %55 = vector.extract_strided_slice %2 {offsets = [7, 0], sizes = [1, 256], strides = [1, 1]} : vector<9x256xf32> to vector<1x256xf32>
    %56 = vector.broadcast %55 : vector<1x256xf32> to vector<4x256xf32>
    %57 = arith.mulf %54, %56 : vector<4x256xf32>
    %c7 = arith.constant 7 : index
    %c0_25 = arith.constant 0 : index
    %c0_26 = arith.constant 0 : index
    %58 = vector.load %arg2[%c7, %c0_25, %c0_26] : memref<9x8x4xf32, #tpu.memory_space<vmem>>, vector<1x8x4xf32>
    %59 = vector.shape_cast %58 : vector<1x8x4xf32> to vector<8x4xf32>
    %cst_27 = arith.constant dense<0.000000e+00> : vector<8x256xf32>
    %60 = tpu.matmul %59, %57, %cst_27 {dimension_numbers = #tpu.dot_dimension_numbers<[1], [0], [0], [1], [0, 0, 1, 1], [], []>} : vector<8x4xf32>, vector<4x256xf32>, vector<8x256xf32> -> vector<8x256xf32>
    %61 = arith.addf %53, %60 : vector<8x256xf32>
    %c239_i32 = arith.constant 239 : i32
    %62 = tpu.dynamic_rotate %1 by %c239_i32 dim 1 : vector<4x256xf32>, i32 -> vector<4x256xf32>
    %63 = vector.extract_strided_slice %2 {offsets = [8, 0], sizes = [1, 256], strides = [1, 1]} : vector<9x256xf32> to vector<1x256xf32>
    %64 = vector.broadcast %63 : vector<1x256xf32> to vector<4x256xf32>
    %65 = arith.mulf %62, %64 : vector<4x256xf32>
    %c8 = arith.constant 8 : index
    %c0_28 = arith.constant 0 : index
    %c0_29 = arith.constant 0 : index
    %66 = vector.load %arg2[%c8, %c0_28, %c0_29] : memref<9x8x4xf32, #tpu.memory_space<vmem>>, vector<1x8x4xf32>
    %67 = vector.shape_cast %66 : vector<1x8x4xf32> to vector<8x4xf32>
    %cst_30 = arith.constant dense<0.000000e+00> : vector<8x256xf32>
    %68 = tpu.matmul %67, %65, %cst_30 {dimension_numbers = #tpu.dot_dimension_numbers<[1], [0], [0], [1], [0, 0, 1, 1], [], []>} : vector<8x4xf32>, vector<4x256xf32>, vector<8x256xf32> -> vector<8x256xf32>
    %69 = arith.addf %61, %68 : vector<8x256xf32>
    %c0_31 = arith.constant 0 : index
    %c0_32 = arith.constant 0 : index
    %70 = vector.load %arg3[%c0_31, %c0_32] : memref<8x1xf32, #tpu.memory_space<vmem>>, vector<8x1xf32>
    %71 = vector.broadcast %70 : vector<8x1xf32> to vector<8x256xf32>
    %72 = arith.addf %69, %71 : vector<8x256xf32>
    %cst_33 = arith.constant 0.000000e+00 : f32
    %73 = vector.broadcast %cst_33 : f32 to vector<8x256xf32>
    %74 = arith.maximumf %72, %73 : vector<8x256xf32>
    %c17_i32_34 = arith.constant 17 : i32
    %75 = tpu.dynamic_rotate %74 by %c17_i32_34 dim 1 : vector<8x256xf32>, i32 -> vector<8x256xf32>
    %76 = vector.extract_strided_slice %2 {offsets = [0, 0], sizes = [1, 256], strides = [1, 1]} : vector<9x256xf32> to vector<1x256xf32>
    %77 = vector.broadcast %76 : vector<1x256xf32> to vector<8x256xf32>
    %78 = arith.mulf %75, %77 : vector<8x256xf32>
    %c0_35 = arith.constant 0 : index
    %c0_36 = arith.constant 0 : index
    %c0_37 = arith.constant 0 : index
    %79 = vector.load %arg4[%c0_35, %c0_36, %c0_37] : memref<9x4x8xf32, #tpu.memory_space<vmem>>, vector<1x4x8xf32>
    %80 = vector.shape_cast %79 : vector<1x4x8xf32> to vector<4x8xf32>
    %cst_38 = arith.constant dense<0.000000e+00> : vector<4x256xf32>
    %81 = tpu.matmul %80, %78, %cst_38 {dimension_numbers = #tpu.dot_dimension_numbers<[1], [0], [0], [1], [0, 0, 1, 1], [], []>} : vector<4x8xf32>, vector<8x256xf32>, vector<4x256xf32> -> vector<4x256xf32>
    %c16_i32_39 = arith.constant 16 : i32
    %82 = tpu.dynamic_rotate %74 by %c16_i32_39 dim 1 : vector<8x256xf32>, i32 -> vector<8x256xf32>
    %83 = vector.extract_strided_slice %2 {offsets = [1, 0], sizes = [1, 256], strides = [1, 1]} : vector<9x256xf32> to vector<1x256xf32>
    %84 = vector.broadcast %83 : vector<1x256xf32> to vector<8x256xf32>
    %85 = arith.mulf %82, %84 : vector<8x256xf32>
    %c1_40 = arith.constant 1 : index
    %c0_41 = arith.constant 0 : index
    %c0_42 = arith.constant 0 : index
    %86 = vector.load %arg4[%c1_40, %c0_41, %c0_42] : memref<9x4x8xf32, #tpu.memory_space<vmem>>, vector<1x4x8xf32>
    %87 = vector.shape_cast %86 : vector<1x4x8xf32> to vector<4x8xf32>
    %cst_43 = arith.constant dense<0.000000e+00> : vector<4x256xf32>
    %88 = tpu.matmul %87, %85, %cst_43 {dimension_numbers = #tpu.dot_dimension_numbers<[1], [0], [0], [1], [0, 0, 1, 1], [], []>} : vector<4x8xf32>, vector<8x256xf32>, vector<4x256xf32> -> vector<4x256xf32>
    %89 = arith.addf %81, %88 : vector<4x256xf32>
    %c15_i32_44 = arith.constant 15 : i32
    %90 = tpu.dynamic_rotate %74 by %c15_i32_44 dim 1 : vector<8x256xf32>, i32 -> vector<8x256xf32>
    %91 = vector.extract_strided_slice %2 {offsets = [2, 0], sizes = [1, 256], strides = [1, 1]} : vector<9x256xf32> to vector<1x256xf32>
    %92 = vector.broadcast %91 : vector<1x256xf32> to vector<8x256xf32>
    %93 = arith.mulf %90, %92 : vector<8x256xf32>
    %c2_45 = arith.constant 2 : index
    %c0_46 = arith.constant 0 : index
    %c0_47 = arith.constant 0 : index
    %94 = vector.load %arg4[%c2_45, %c0_46, %c0_47] : memref<9x4x8xf32, #tpu.memory_space<vmem>>, vector<1x4x8xf32>
    %95 = vector.shape_cast %94 : vector<1x4x8xf32> to vector<4x8xf32>
    %cst_48 = arith.constant dense<0.000000e+00> : vector<4x256xf32>
    %96 = tpu.matmul %95, %93, %cst_48 {dimension_numbers = #tpu.dot_dimension_numbers<[1], [0], [0], [1], [0, 0, 1, 1], [], []>} : vector<4x8xf32>, vector<8x256xf32>, vector<4x256xf32> -> vector<4x256xf32>
    %97 = arith.addf %89, %96 : vector<4x256xf32>
    %c1_i32_49 = arith.constant 1 : i32
    %98 = tpu.dynamic_rotate %74 by %c1_i32_49 dim 1 : vector<8x256xf32>, i32 -> vector<8x256xf32>
    %99 = vector.extract_strided_slice %2 {offsets = [3, 0], sizes = [1, 256], strides = [1, 1]} : vector<9x256xf32> to vector<1x256xf32>
    %100 = vector.broadcast %99 : vector<1x256xf32> to vector<8x256xf32>
    %101 = arith.mulf %98, %100 : vector<8x256xf32>
    %c3_50 = arith.constant 3 : index
    %c0_51 = arith.constant 0 : index
    %c0_52 = arith.constant 0 : index
    %102 = vector.load %arg4[%c3_50, %c0_51, %c0_52] : memref<9x4x8xf32, #tpu.memory_space<vmem>>, vector<1x4x8xf32>
    %103 = vector.shape_cast %102 : vector<1x4x8xf32> to vector<4x8xf32>
    %cst_53 = arith.constant dense<0.000000e+00> : vector<4x256xf32>
    %104 = tpu.matmul %103, %101, %cst_53 {dimension_numbers = #tpu.dot_dimension_numbers<[1], [0], [0], [1], [0, 0, 1, 1], [], []>} : vector<4x8xf32>, vector<8x256xf32>, vector<4x256xf32> -> vector<4x256xf32>
    %105 = arith.addf %97, %104 : vector<4x256xf32>
    %c4_54 = arith.constant 4 : index
    %c0_55 = arith.constant 0 : index
    %c0_56 = arith.constant 0 : index
    %106 = vector.load %arg4[%c4_54, %c0_55, %c0_56] : memref<9x4x8xf32, #tpu.memory_space<vmem>>, vector<1x4x8xf32>
    %107 = vector.shape_cast %106 : vector<1x4x8xf32> to vector<4x8xf32>
    %cst_57 = arith.constant dense<0.000000e+00> : vector<4x256xf32>
    %108 = tpu.matmul %107, %74, %cst_57 {dimension_numbers = #tpu.dot_dimension_numbers<[1], [0], [0], [1], [0, 0, 1, 1], [], []>} : vector<4x8xf32>, vector<8x256xf32>, vector<4x256xf32> -> vector<4x256xf32>
    %109 = arith.addf %105, %108 : vector<4x256xf32>
    %c255_i32_58 = arith.constant 255 : i32
    %110 = tpu.dynamic_rotate %74 by %c255_i32_58 dim 1 : vector<8x256xf32>, i32 -> vector<8x256xf32>
    %111 = vector.extract_strided_slice %2 {offsets = [5, 0], sizes = [1, 256], strides = [1, 1]} : vector<9x256xf32> to vector<1x256xf32>
    %112 = vector.broadcast %111 : vector<1x256xf32> to vector<8x256xf32>
    %113 = arith.mulf %110, %112 : vector<8x256xf32>
    %c5_59 = arith.constant 5 : index
    %c0_60 = arith.constant 0 : index
    %c0_61 = arith.constant 0 : index
    %114 = vector.load %arg4[%c5_59, %c0_60, %c0_61] : memref<9x4x8xf32, #tpu.memory_space<vmem>>, vector<1x4x8xf32>
    %115 = vector.shape_cast %114 : vector<1x4x8xf32> to vector<4x8xf32>
    %cst_62 = arith.constant dense<0.000000e+00> : vector<4x256xf32>
    %116 = tpu.matmul %115, %113, %cst_62 {dimension_numbers = #tpu.dot_dimension_numbers<[1], [0], [0], [1], [0, 0, 1, 1], [], []>} : vector<4x8xf32>, vector<8x256xf32>, vector<4x256xf32> -> vector<4x256xf32>
    %117 = arith.addf %109, %116 : vector<4x256xf32>
    %c241_i32_63 = arith.constant 241 : i32
    %118 = tpu.dynamic_rotate %74 by %c241_i32_63 dim 1 : vector<8x256xf32>, i32 -> vector<8x256xf32>
    %119 = vector.extract_strided_slice %2 {offsets = [6, 0], sizes = [1, 256], strides = [1, 1]} : vector<9x256xf32> to vector<1x256xf32>
    %120 = vector.broadcast %119 : vector<1x256xf32> to vector<8x256xf32>
    %121 = arith.mulf %118, %120 : vector<8x256xf32>
    %c6_64 = arith.constant 6 : index
    %c0_65 = arith.constant 0 : index
    %c0_66 = arith.constant 0 : index
    %122 = vector.load %arg4[%c6_64, %c0_65, %c0_66] : memref<9x4x8xf32, #tpu.memory_space<vmem>>, vector<1x4x8xf32>
    %123 = vector.shape_cast %122 : vector<1x4x8xf32> to vector<4x8xf32>
    %cst_67 = arith.constant dense<0.000000e+00> : vector<4x256xf32>
    %124 = tpu.matmul %123, %121, %cst_67 {dimension_numbers = #tpu.dot_dimension_numbers<[1], [0], [0], [1], [0, 0, 1, 1], [], []>} : vector<4x8xf32>, vector<8x256xf32>, vector<4x256xf32> -> vector<4x256xf32>
    %125 = arith.addf %117, %124 : vector<4x256xf32>
    %c240_i32_68 = arith.constant 240 : i32
    %126 = tpu.dynamic_rotate %74 by %c240_i32_68 dim 1 : vector<8x256xf32>, i32 -> vector<8x256xf32>
    %127 = vector.extract_strided_slice %2 {offsets = [7, 0], sizes = [1, 256], strides = [1, 1]} : vector<9x256xf32> to vector<1x256xf32>
    %128 = vector.broadcast %127 : vector<1x256xf32> to vector<8x256xf32>
    %129 = arith.mulf %126, %128 : vector<8x256xf32>
    %c7_69 = arith.constant 7 : index
    %c0_70 = arith.constant 0 : index
    %c0_71 = arith.constant 0 : index
    %130 = vector.load %arg4[%c7_69, %c0_70, %c0_71] : memref<9x4x8xf32, #tpu.memory_space<vmem>>, vector<1x4x8xf32>
    %131 = vector.shape_cast %130 : vector<1x4x8xf32> to vector<4x8xf32>
    %cst_72 = arith.constant dense<0.000000e+00> : vector<4x256xf32>
    %132 = tpu.matmul %131, %129, %cst_72 {dimension_numbers = #tpu.dot_dimension_numbers<[1], [0], [0], [1], [0, 0, 1, 1], [], []>} : vector<4x8xf32>, vector<8x256xf32>, vector<4x256xf32> -> vector<4x256xf32>
    %133 = arith.addf %125, %132 : vector<4x256xf32>
    %c239_i32_73 = arith.constant 239 : i32
    %134 = tpu.dynamic_rotate %74 by %c239_i32_73 dim 1 : vector<8x256xf32>, i32 -> vector<8x256xf32>
    %135 = vector.extract_strided_slice %2 {offsets = [8, 0], sizes = [1, 256], strides = [1, 1]} : vector<9x256xf32> to vector<1x256xf32>
    %136 = vector.broadcast %135 : vector<1x256xf32> to vector<8x256xf32>
    %137 = arith.mulf %134, %136 : vector<8x256xf32>
    %c8_74 = arith.constant 8 : index
    %c0_75 = arith.constant 0 : index
    %c0_76 = arith.constant 0 : index
    %138 = vector.load %arg4[%c8_74, %c0_75, %c0_76] : memref<9x4x8xf32, #tpu.memory_space<vmem>>, vector<1x4x8xf32>
    %139 = vector.shape_cast %138 : vector<1x4x8xf32> to vector<4x8xf32>
    %cst_77 = arith.constant dense<0.000000e+00> : vector<4x256xf32>
    %140 = tpu.matmul %139, %137, %cst_77 {dimension_numbers = #tpu.dot_dimension_numbers<[1], [0], [0], [1], [0, 0, 1, 1], [], []>} : vector<4x8xf32>, vector<8x256xf32>, vector<4x256xf32> -> vector<4x256xf32>
    %141 = arith.addf %133, %140 : vector<4x256xf32>
    %c0_78 = arith.constant 0 : index
    %c0_79 = arith.constant 0 : index
    %142 = vector.load %arg5[%c0_78, %c0_79] : memref<4x1xf32, #tpu.memory_space<vmem>>, vector<4x1xf32>
    %143 = vector.broadcast %142 : vector<4x1xf32> to vector<4x256xf32>
    %144 = arith.addf %141, %143 : vector<4x256xf32>
    %145 = arith.addf %144, %1 : vector<4x256xf32>
    %cst_80 = arith.constant 0.000000e+00 : f32
    %146 = vector.broadcast %cst_80 : f32 to vector<4x256xf32>
    %147 = arith.maximumf %145, %146 : vector<4x256xf32>
    %c0_81 = arith.constant 0 : index
    %c0_82 = arith.constant 0 : index
    %c0_83 = arith.constant 0 : index
    %148 = vector.load %arg7[%c0_81, %c0_82, %c0_83] : memref<1x4x256xf32, #tpu.memory_space<vmem>>, vector<1x4x256xf32>
    %149 = vector.shape_cast %148 : vector<1x4x256xf32> to vector<4x256xf32>
    %150 = vector.shape_cast %147 : vector<4x256xf32> to vector<1x4x256xf32>
    tpu.vector_store %arg7[%c0_81, %c0_82, %c0_83], %150 {strides = array<i32>} : memref<1x4x256xf32, #tpu.memory_space<vmem>>, vector<1x4x256xf32>,
    return
  }
  func.func @transform_0(%arg0: i32) -> (i32, i32, i32) {
    %c0_i32 = arith.constant 0 : i32
    %c0_i32_0 = arith.constant 0 : i32
    %c0_i32_1 = arith.constant 0 : i32
    return %arg0, %c0_i32, %c0_i32_0 : i32, i32, i32
  }
  func.func @transform_1(%arg0: i32) -> (i32, i32, i32) {
    %c0_i32 = arith.constant 0 : i32
    %c0_i32_0 = arith.constant 0 : i32
    %c0_i32_1 = arith.constant 0 : i32
    %c0_i32_2 = arith.constant 0 : i32
    return %c0_i32, %c0_i32_0, %c0_i32_1 : i32, i32, i32
  }
  func.func @transform_2(%arg0: i32) -> (i32, i32) {
    %c0_i32 = arith.constant 0 : i32
    %c0_i32_0 = arith.constant 0 : i32
    %c0_i32_1 = arith.constant 0 : i32
    return %c0_i32, %c0_i32_0 : i32, i32
  }
  func.func @transform_3(%arg0: i32) -> (i32, i32, i32) {
    %c0_i32 = arith.constant 0 : i32
    %c0_i32_0 = arith.constant 0 : i32
    %c0_i32_1 = arith.constant 0 : i32
    %c0_i32_2 = arith.constant 0 : i32
    return %c0_i32, %c0_i32_0, %c0_i32_1 : i32, i32, i32
  }
  func.func @transform_4(%arg0: i32) -> (i32, i32) {
    %c0_i32 = arith.constant 0 : i32
    %c0_i32_0 = arith.constant 0 : i32
    %c0_i32_1 = arith.constant 0 : i32
    return %c0_i32, %c0_i32_0 : i32, i32
  }
  func.func @transform_5(%arg0: i32) -> (i32, i32) {
    %c0_i32 = arith.constant 0 : i32
    %c0_i32_0 = arith.constant 0 : i32
    %c0_i32_1 = arith.constant 0 : i32
    return %c0_i32, %c0_i32_0 : i32, i32
  }
  func.func @transform_6(%arg0: i32) -> (i32, i32, i32) {
    %c0_i32 = arith.constant 0 : i32
    %c0_i32_0 = arith.constant 0 : i32
    %c0_i32_1 = arith.constant 0 : i32
    return %arg0, %c0_i32, %c0_i32_0 : i32, i32, i32
  }
}

</mosaic_0001>

<bundles_post_ra>
// kernel: xblock_forward.1
= control target key start
LH: loop header
LB: loop body
LE: loop exit
PB: predicated region body
PF: predicated region fallthrough
CT: control target
= control target key end

     0   :  { %s1590_s21 = smov 0   ;;  %s1935_s0 = inlined_call_operand.vmem [shape: f32[2,4,256], index: 0, kind: input, shape index: {}]   ;;  %s1936_s1 = inlined_call_operand.vmem [shape: f32[9,8,4], index: 1, kind: input, shape index: {}]   ;;  %s1937_s2 = inlined_call_operand.vmem [shape: f32[8,1], index: 2, kind: input, shape index: {}]   ;;  %s1938_s3 = inlined_call_operand.vmem [shape: f32[9,4,8], index: 3, kind: input, shape index: {}]   ;;  %s1939_s4 = inlined_call_operand.vmem [shape: f32[4,1], index: 4, kind: input, shape index: {}]   ;;  %s1940_s5 = inlined_call_operand.vmem [shape: f32[9,256], index: 5, kind: input, shape index: {}]   ;;  %s1941_s6 = inlined_call_operand.vmem [shape: f32[2,4,256], index: 6, kind: output, shape index: {}]  }
   0x1 LB: > { %s1434_s22 = sadd.s32 4294967295, %s1544_s21   ;;  %p1438_p0 = scmp.ge.s32.totalorder %s1544_s21, 1  ;;  %s1544_s21 = sphi %s1590_s21, %s16_s21  }
   0x2   : > { %p212_p1 = scmp.lt.s32.totalorder %s1544_s21, 3 }
   0x4   : > { %p213_p2 = pnand %p1438_p0, %p212_p1 }
   0x5   : > { %p242_p3 = scmp.lt.s32.totalorder (!%p213_p2), %s1434_s22, 1  ;;  %s1546_s27 = smov (!%p213_p2), 17  }
   0x6   : > { %216 = sbr.rel (%p213_p2) target bundleno = 635 (0x27b), region = 44  ;;  %s1547_s28 = smov (!%p213_p2), 16  }
   0x7   : > { %s1548_s29 = smov (!%p213_p2), 15   ;;  %s1549_s30 = smov (!%p213_p2), 1  }
   0x8   : > { %s1550_s7 = smov (!%p213_p2), 127   ;;  %s1551_s8 = smov (!%p213_p2), 113  }
   0x9   : > { %s1552_s9 = smov (!%p213_p2), 112   ;;  %s1553_s10 = smov (!%p213_p2), 111  }
   0xb   : > { %s1943_s22 = smov (!%p242_p3, %s1434_s22), 1  ;;  %v267_v19 = vlaneseq  ;;  %v1631_v23 = vld [vmem:[%s1940_s5 + $0x8] sm:$0xff]  ;;  %v1636_v24 = vld [vmem:[%s1940_s5] sm:$0xff]  ;;  %vm299_vm1 = vcmask 1043456   ;;  %vm295_vm2 = vcmask 31744   ;;  %v1452_v57 = vld [vmem:[%s1936_s1 + $0x10] sm:$0xff] }
   0xc   : > { %s1515_s23 = sshll.u32 %s1943_s22, 3  ;;  %v273_v25 = vperm.slane %v1631_v23, 0  ;;  %v272_v26 = vperm.slane %v1636_v24, 0  ;;  %v276_v32 = vld [vmem:[%s1936_s1] sm:$0xff]  ;;  %v290_v35 = vperm.slane %v1631_v23, 1  ;;  %v289_v36 = vperm.slane %v1636_v24, 1 }
   0xd   : > { %s246_s26 = scalar_lea.vmem %s1935_s0, %s1515_s23  ;;  %v1626_v21 = vand.u32 127, %v267_v19  ;;  %v407_v37 = vperm.slane %v1636_v24, 2  ;;  %v408_v38 = vperm.slane %v1631_v23, 2  ;;  %v1443_v45 = vld [vmem:[%s1936_s1 + $0x8] sm:$0xff]  ;;  %v476_v49 = vperm.slane %v1636_v24, 3  ;;  %v1457_v58 = vld [vmem:[%s1936_s1 + $0x18] sm:$0xff] }
   0xe   : > { %v252_v0 = vld [vmem:[%s246_s26] sm:$0xff]  ;;  %v477_v50 = vperm.slane %v1631_v23, 3  ;;  %v599_v62 = vperm.slane %v1636_v24, 5  ;;  %v600_v63 = vperm.slane %v1631_v23, 5  ;;  %vm892_vm10 = vcmask 64512  }
   0xf   : > { %258 = vst [vmem:[#allocation1] ss:$2 sm:$0xff] %v252_v0  ;;  %vm269_vm0 = vcmp.lt.s32.totalorder %v1626_v21, 17  ;;  %vm404_vm3 = vcmp.lt.s32.totalorder %v1626_v21, 15  ;;  %vm286_vm4 = vcmp.lt.s32.totalorder %v1626_v21, 16  ;;  %vm473_vm5 = vcmp.lt.s32.totalorder %v1626_v21, 1 }
  0x10   : > { %v1462_v59 = vld [vmem:[%s1936_s1 + $0x20] sm:$0xff]  ;;  %vm596_vm6 = vcmp.lt.s32.totalorder %v1626_v21, 127  ;;  %vm665_vm7 = vcmp.lt.s32.totalorder %v1626_v21, 113  ;;  %vm734_vm8 = vcmp.lt.s32.totalorder %v1626_v21, 112  ;;  %vm803_vm9 = vcmp.lt.s32.totalorder %v1626_v21, 111 }
  0x11   : > { %v863_v61 = vld [vmem:[%s1937_s2] sm:$0xff] }
  0x12   : > { %v1510_v21 = vld [vmem:[%s1938_s3 + $0x20] sm:$0xf] }
  0x16   : > { %v259_v1 = vld.sshfl [vmem:[#allocation1] sm:$0xff pattern:$0x75316420]  ;;  %v260_v2 = vld.sshfl [vmem:[#allocation1 + $0x8] sm:$0xff pattern:$0x75316420] }
  0x17   : > { %263 = vrot.lane.b32.xlu0 %v259_v1, %s1546_s27  ;;  %277 = vst [vmem:[#allocation1] ss:$2 sm:$0xff] %v252_v0 }
  0x1e   : > { %v278_v3 = vld.sshfl [vmem:[#allocation1] sm:$0xff pattern:$0x75316420]  ;;  %v279_v4 = vld.sshfl [vmem:[#allocation1 + $0x8] sm:$0xff pattern:$0x75316420] }
  0x1f   : > { %282 = vrot.lane.b32.xlu1 %v278_v3, %s1547_s28  ;;  %265 = vrot.lane.b32.xlu0 %v260_v2, %s1546_s27  ;;  %395 = vst [vmem:[#allocation1] ss:$2 sm:$0xff] %v252_v0 }
  0x26   : > { %v396_v5 = vld.sshfl [vmem:[#allocation1] sm:$0xff pattern:$0x75316420]  ;;  %v397_v6 = vld.sshfl [vmem:[#allocation1 + $0x8] sm:$0xff pattern:$0x75316420] }
  0x27   : > { %284 = vrot.lane.b32.xlu1 %v279_v4, %s1547_s28  ;;  %464 = vst [vmem:[#allocation1] ss:$2 sm:$0xff] %v252_v0  ;;  %400 = vrot.lane.b32.xlu2 %v396_v5, %s1548_s29 }
  0x2e   : > { %v466_v7 = vld.sshfl [vmem:[#allocation1 + $0x8] sm:$0xff pattern:$0x75316420]  ;;  %v465_v8 = vld.sshfl [vmem:[#allocation1] sm:$0xff pattern:$0x75316420] }
  0x2f   : > { %471 = vrot.lane.b32.xlu1 %v466_v7, %s1549_s30  ;;  %469 = vrot.lane.b32.xlu0 %v465_v8, %s1549_s30  ;;  %535 = vst [vmem:[#allocation1] ss:$2 sm:$0xff] %v252_v0  ;;  %v668_v8 = vperm.slane %v1636_v24, 6 }
  0x30   : > { %402 = vrot.lane.b32.xlu2 %v397_v6, %s1548_s29  ;;  %v1467_v6 = vld [vmem:[%s1936_s1 + $0x28] sm:$0xff] }
  0x36   : > { %v1614_v9 = vld.sshfl [vmem:[#allocation1] sm:$0xff pattern:$0x75316420]  ;;  %v1616_v10 = vld.sshfl [vmem:[#allocation1 + $0x8] sm:$0xff pattern:$0x75316420] }
  0x37   : > { %587 = vst [vmem:[#allocation1] ss:$2 sm:$0xff] %v252_v0 }
  0x3e   : > { %v589_v11 = vld.sshfl [vmem:[#allocation1 + $0x8] sm:$0xff pattern:$0x75316420]  ;;  %v588_v12 = vld.sshfl [vmem:[#allocation1] sm:$0xff pattern:$0x75316420] }
  0x3f   : > { %594 = vrot.lane.b32.xlu0 %v589_v11, %s1550_s7  ;;  %656 = vst [vmem:[#allocation1] ss:$2 sm:$0xff] %v252_v0  ;;  %592 = vrot.lane.b32.xlu2 %v588_v12, %s1550_s7 }
  0x46   : > { %v657_v13 = vld.sshfl [vmem:[#allocation1] sm:$0xff pattern:$0x75316420]  ;;  %v658_v14 = vld.sshfl [vmem:[#allocation1 + $0x8] sm:$0xff pattern:$0x75316420] }
  0x47   : > { %661 = vrot.lane.b32.xlu1 %v657_v13, %s1551_s8  ;;  %725 = vst [vmem:[#allocation1] ss:$2 sm:$0xff] %v252_v0  ;;  %663 = vrot.lane.b32.xlu2 %v658_v14, %s1551_s8 }
  0x4e   : > { %v727_v15 = vld.sshfl [vmem:[#allocation1 + $0x8] sm:$0xff pattern:$0x75316420]  ;;  %v726_v16 = vld.sshfl [vmem:[#allocation1] sm:$0xff pattern:$0x75316420] }
  0x4f   : > { %732 = vrot.lane.b32.xlu1 %v727_v15, %s1552_s9  ;;  %730 = vrot.lane.b32.xlu0 %v726_v16, %s1552_s9  ;;  %794 = vst [vmem:[#allocation1] ss:$2 sm:$0xff] %v252_v0  ;;  %v1472_v15 = vld [vmem:[%s1936_s1 + $0x30] sm:$0xff]  ;;  %v737_v16 = vperm.slane %v1636_v24, 7 }
  0x56   : > { %v796_v17 = vld.sshfl [vmem:[#allocation1 + $0x8] sm:$0xff pattern:$0x75316420]  ;;  %v795_v18 = vld.sshfl [vmem:[#allocation1] sm:$0xff pattern:$0x75316420] }
  0x57   : > { %801 = vrot.lane.b32.xlu0 %v796_v17, %s1553_s10  ;;  %799 = vrot.lane.b32.xlu2 %v795_v18, %s1553_s10  ;;  %1364 = vst [vmem:[#allocation1] ss:$2 sm:$0xff] %v252_v0  ;;  %v1554_v0 = vmov 0   ;;  %v738_v17 = vperm.slane %v1631_v23, 7 }
  0x58   : > { %1534 = vset.pattern.permute.xlu1 %v1554_v0  ;;  %1535 = vset.pattern.permute.xlu0 %v1554_v0 }
  0x59   : > { %866 = vperm.xlu1 %1534, %v863_v61  }
  0x81   : > { %v401_v22 = vpop.permute.xlu2 %400 }
  0x89   : > { %v264_v20 = vpop.permute.xlu0 %263 }
  0x8a   : > { %v403_v34 = vpop.permute.xlu2 %402 }
  0x8b   : > { %v405_v39 = vsel %vm404_vm3, %v401_v22, %v403_v34  ;;  %v406_v40 = vsel %vm404_vm3, %v403_v34, %v401_v22 }
  0x8c   : > { %v409_v47 = vmul.f32 %v407_v37, %v406_v40  ;;  %v410_v48 = vmul.f32 %v408_v38, %v405_v39 }
  0x91   : > { %v283_v27 = vpop.permute.xlu1 %282  ;;  %v266_v28 = vpop.permute.xlu0 %265 }
  0x92   : > { %v270_v29 = vsel %vm269_vm0, %v264_v20, %v266_v28  ;;  %v271_v30 = vsel %vm269_vm0, %v266_v28, %v264_v20 }
  0x93   : > { %v275_v31 = vmul.f32 %v273_v25, %v270_v29  ;;  %v274_v33 = vmul.f32 %v272_v26, %v271_v30  ;;  %v1477_v29 = vld [vmem:[%s1936_s1 + $0x38] sm:$0xff]  ;;  %v1780_v30 = vld [vmem:[%s1940_s5 + $0x10] ss:$0 sm:$0xff] }
  0x95   : > { %1450 = vmatpush.msk.msra.mxu3 %vm299_vm1, %v275_v31  ;;  %1448 = vmatpush.msk.msra.mxu2 %vm299_vm1, %v274_v33  ;;  %v1785_v31 = vld [vmem:[%s1940_s5 + $0x18] ss:$0 sm:$0xff] }
  0x96   : > { %1451 = vmatmul.msk.f32.vlgmr.msra.gmra.mxu3 %vm295_vm2, %v276_v32  ;;  %1449 = vmatmul.msk.f32.vlgmr.msra.gmra.mxu2 %vm295_vm2, %v276_v32 }
  0x99   : > { %v285_v41 = vpop.permute.xlu1 %284  ;;  %v593_v60 = vpop.permute.xlu2 %592 }
  0x9a   : > { %v287_v42 = vsel %vm286_vm4, %v283_v27, %v285_v41  ;;  %v288_v43 = vsel %vm286_vm4, %v285_v41, %v283_v27 }
  0x9b   : > { %v292_v44 = vmul.f32 %v290_v35, %v287_v42  ;;  %v291_v46 = vmul.f32 %v289_v36, %v288_v43  ;;  %v1482_v42 = vld [vmem:[%s1936_s1 + $0x40] sm:$0xff] }
  0x9d   : > { %1446 = vmatpush.msk.msra.mxu1 %vm299_vm1, %v292_v44  ;;  %1444 = vmatpush.msk.msra.mxu0 %vm299_vm1, %v291_v46 }
  0x9e   : > { %1447 = vmatmul.msk.f32.vlgmr.msra.gmra.mxu1 %vm295_vm2, %v1443_v45  ;;  %1445 = vmatmul.msk.f32.vlgmr.msra.gmra.mxu0 %vm295_vm2, %v1443_v45 }
  0x9f   : > { %1455 = vmatpush.msk.msrb.mxu1 %vm299_vm1, %v410_v48  ;;  %1453 = vmatpush.msk.msrb.mxu0 %vm299_vm1, %v409_v47 }
  0xa1   : > { %1465 = vmatpush.msk.msra.mxu1 %vm299_vm1, %v1616_v10  ;;  %1463 = vmatpush.msk.msra.mxu0 %vm299_vm1, %v1614_v9  ;;  %v472_v51 = vpop.permute.xlu1 %471  ;;  %v470_v52 = vpop.permute.xlu0 %469  ;;  %v669_v9 = vperm.slane %v1631_v23, 6 }
  0xa2   : > { %v474_v53 = vsel %vm473_vm5, %v470_v52, %v472_v51  ;;  %v475_v54 = vsel %vm473_vm5, %v472_v51, %v470_v52  ;;  %v664_v7 = vpop.permute.xlu2 %663 }
  0xa3   : > { %v478_v55 = vmul.f32 %v476_v49, %v475_v54  ;;  %v479_v56 = vmul.f32 %v477_v50, %v474_v53 }
  0xa5   : > { %1460 = vmatpush.msk.msrb.mxu3 %vm299_vm1, %v479_v56  ;;  %1458 = vmatpush.msk.msrb.mxu2 %vm299_vm1, %v478_v55 }
  0xa6   : > { %1456 = vmatmul.msk.f32.vlgmr.msrb.gmra.mxu1 %vm295_vm2, %v1452_v57  ;;  %1461 = vmatmul.msk.f32.vlgmr.msrb.gmra.mxu3 %vm295_vm2, %v1457_v58 }
  0xa7   : > { %1454 = vmatmul.msk.f32.vlgmr.msrb.gmra.mxu0 %vm295_vm2, %v1452_v57  ;;  %1459 = vmatmul.msk.f32.vlgmr.msrb.gmra.mxu2 %vm295_vm2, %v1457_v58 }
  0xae   : > { %1466 = vmatmul.msk.f32.vlgmr.msra.gmra.mxu1 %vm295_vm2, %v1462_v59 }
  0xaf   : > { %1464 = vmatmul.msk.f32.vlgmr.msra.gmra.mxu0 %vm295_vm2, %v1462_v59 }
  0xb1   : > { %v595_v1 = vpop.permute.xlu0 %594  ;;  %v800_v32 = vpop.permute.xlu2 %799 }
  0xb2   : > { %v597_v2 = vsel %vm596_vm6, %v593_v60, %v595_v1  ;;  %v598_v3 = vsel %vm596_vm6, %v595_v1, %v593_v60 }
  0xb3   : > { %v601_v4 = vmul.f32 %v599_v62, %v597_v2  ;;  %v602_v5 = vmul.f32 %v600_v63, %v598_v3 }
  0xb5   : > { %1468 = vmatpush.msk.msra.mxu2 %vm299_vm1, %v601_v4  ;;  %1470 = vmatpush.msk.msra.mxu3 %vm299_vm1, %v602_v5 }
  0xb6   : > { %1469 = vmatmul.msk.f32.vlgmr.msra.gmra.mxu2 %vm295_vm2, %v1467_v6  ;;  %1471 = vmatmul.msk.f32.vlgmr.msra.gmra.mxu3 %vm295_vm2, %v1467_v6 }
  0xb9   : > { %v662_v10 = vpop.permute.xlu1 %661 }
  0xba   : > { %v666_v11 = vsel %vm665_vm7, %v662_v10, %v664_v7  ;;  %v667_v12 = vsel %vm665_vm7, %v664_v7, %v662_v10 }
  0xbb   : > { %v670_v13 = vmul.f32 %v668_v8, %v666_v11  ;;  %v671_v14 = vmul.f32 %v669_v9, %v667_v12 }
  0xbd   : > { %1473 = vmatpush.msk.msrb.mxu0 %vm299_vm1, %v670_v13  ;;  %1475 = vmatpush.msk.msrb.mxu1 %vm299_vm1, %v671_v14 }
  0xbe   : > { %1474 = vmatmul.msk.f32.vlgmr.msrb.gmra.mxu0 %vm295_vm2, %v1472_v15  ;;  %1476 = vmatmul.msk.f32.vlgmr.msrb.gmra.mxu1 %vm295_vm2, %v1472_v15 }
  0xc1   : > { %v733_v18 = vpop.permute.xlu1 %732  ;;  %v731_v19 = vpop.permute.xlu0 %730 }
  0xc2   : > { %v735_v20 = vsel %vm734_vm8, %v731_v19, %v733_v18  ;;  %v736_v22 = vsel %vm734_vm8, %v733_v18, %v731_v19 }
  0xc3   : > { %v739_v27 = vmul.f32 %v737_v16, %v735_v20  ;;  %v740_v28 = vmul.f32 %v738_v17, %v736_v22 }
  0xc5   : > { %1478 = vmatpush.msk.msrb.mxu2 %vm299_vm1, %v739_v27  ;;  %1480 = vmatpush.msk.msrb.mxu3 %vm299_vm1, %v740_v28 }
  0xc6   : > { %1479 = vmatmul.msk.f32.vlgmr.msrb.gmra.mxu2 %vm295_vm2, %v1477_v29  ;;  %1481 = vmatmul.msk.f32.vlgmr.msrb.gmra.mxu3 %vm295_vm2, %v1477_v29 }
  0xc9   : > { %v802_v33 = vpop.permute.xlu0 %801 }
  0xca   : > { %v804_v34 = vsel %vm803_vm9, %v800_v32, %v802_v33  ;;  %v805_v39 = vsel %vm803_vm9, %v802_v33, %v800_v32 }
  0xcb   : > { %v808_v40 = vmul.f32 %v1780_v30, %v804_v34  ;;  %v809_v41 = vmul.f32 %v1785_v31, %v805_v39  ;;  %v867_v15 = vpop.permute.xlu1 %866 }
  0xcd   : > { %1483 = vmatpush.msk.msra.mxu0 %vm299_vm1, %v808_v40  ;;  %1485 = vmatpush.msk.msra.mxu1 %vm299_vm1, %v809_v41 }
  0xce   : > { %1484 = vmatmul.msk.f32.vlgmr.msra.gmra.mxu0 %vm295_vm2, %v1482_v42  ;;  %1486 = vmatmul.msk.f32.vlgmr.msra.gmra.mxu1 %vm295_vm2, %v1482_v42 }
 0x119   : > { %v372_v45 = vpop.f32.mrf.mxu2  ;;  %v392_v46 = vpop.f32.mrf.mxu3 }
 0x11b   : > { %v323_v43 = vpop.f32.mrf.mxu0  ;;  %v343_v44 = vpop.f32.mrf.mxu1 }
 0x11c   : > { %v393_v51 = vadd.f32 %v392_v46, %v343_v44  ;;  %v373_v52 = vadd.f32 %v372_v45, %v323_v43 }
 0x123   : > { %v459_v48 = vpop.f32.mrf.mxu1 }
 0x124   : > { %v439_v47 = vpop.f32.mrf.mxu0  ;;  %v463_v56 = vadd.f32 %v459_v48, %v393_v51 }
 0x125   : > { %v462_v57 = vadd.f32 %v439_v47, %v373_v52  ;;  %v1487_v52 = vld [vmem:[%s1938_s3 + $0x4] sm:$0xf] }
 0x129   : > { %v528_v54 = vpop.f32.mrf.mxu3 }
 0x12a   : > { %v508_v53 = vpop.f32.mrf.mxu2  ;;  %v532_v59 = vadd.f32 %v528_v54, %v463_v56  ;;  %v881_v56 = vld [vmem:[%s1938_s3] sm:$0xf] }
 0x12b   : > { %v582_v58 = vpop.f32.mrf.mxu1  ;;  %v531_v60 = vadd.f32 %v508_v53, %v462_v57 }
 0x12c   : > { %v562_v55 = vpop.f32.mrf.mxu0  ;;  %v586_v1 = vadd.f32 %v582_v58, %v532_v59  ;;  %v1492_v58 = vld [vmem:[%s1938_s3 + $0x8] sm:$0xf] }
 0x12d   : > { %v585_v2 = vadd.f32 %v562_v55, %v531_v60 }
 0x139   : > { %v631_v61 = vpop.f32.mrf.mxu2  ;;  %v651_v0 = vpop.f32.mrf.mxu3 }
 0x13a   : > { %v654_v5 = vadd.f32 %v631_v61, %v585_v2  ;;  %v655_v6 = vadd.f32 %v651_v0, %v586_v1 }
 0x13b   : > { %v700_v3 = vpop.f32.mrf.mxu0  ;;  %v720_v4 = vpop.f32.mrf.mxu1 }
 0x13c   : > { %v723_v7 = vadd.f32 %v700_v3, %v654_v5  ;;  %v724_v10 = vadd.f32 %v720_v4, %v655_v6  ;;  %v1495_v5 = vld [vmem:[%s1938_s3 + $0xc] sm:$0xf]  ;;  %v1498_v6 = vld [vmem:[%s1938_s3 + $0x10] sm:$0xf] }
 0x149   : > { %v769_v11 = vpop.f32.mrf.mxu2  ;;  %v789_v12 = vpop.f32.mrf.mxu3 }
 0x14a   : > { %v792_v13 = vadd.f32 %v769_v11, %v723_v7  ;;  %v793_v14 = vadd.f32 %v789_v12, %v724_v10  ;;  %v1501_v12 = vld [vmem:[%s1938_s3 + $0x14] sm:$0xf] }
 0x14b   : > { %v838_v18 = vpop.f32.mrf.mxu0  ;;  %v858_v19 = vpop.f32.mrf.mxu1 }
 0x14c   : > { %v861_v20 = vadd.f32 %v838_v18, %v792_v13  ;;  %v862_v22 = vadd.f32 %v858_v19, %v793_v14  ;;  %v1504_v13 = vld [vmem:[%s1938_s3 + $0x18] sm:$0xf] }
 0x14e   : > { %v869_v27 = vadd.f32 %v867_v15, %v861_v20  ;;  %v870_v28 = vadd.f32 %v867_v15, %v862_v22 }
 0x150   : > { %v871_v29 = vmax.f32 %v869_v27, 0.0  ;;  %v872_v32 = vmax.f32 %v870_v28, 0.0 }
 0x152   : > { %884 = vrot.lane.b32.xlu0 %v872_v32, %s1547_s28  ;;  %979 = vrot.lane.b32.xlu1 %v871_v29, %s1548_s29 }
 0x153   : > { %882 = vrot.lane.b32.xlu2 %v871_v29, %s1547_s28  ;;  %s251_s28 = scalar_lea.vmem %s1941_s6, %s1515_s23 }
 0x15a   : > { %873 = vrot.lane.b32.xlu0 %v871_v29, %s1546_s27  ;;  %875 = vrot.lane.b32.xlu1 %v872_v32, %s1546_s27 }
 0x15b   : > { %981 = vrot.lane.b32.xlu2 %v872_v32, %s1548_s29 }
 0x162   : > { %1036 = vrot.lane.b32.xlu0 %v872_v32, %s1549_s30  ;;  %1191 = vrot.lane.b32.xlu1 %v871_v29, %s1551_s8 }
 0x163   : > { %1034 = vrot.lane.b32.xlu2 %v871_v29, %s1549_s30 }
 0x16a   : > { %1136 = vrot.lane.b32.xlu0 %v871_v29, %s1550_s7  ;;  %1138 = vrot.lane.b32.xlu1 %v872_v32, %s1550_s7 }
 0x16b   : > { %1193 = vrot.lane.b32.xlu2 %v872_v32, %s1551_s8 }
 0x172   : > { %1303 = vrot.lane.b32.xlu0 %v872_v32, %s1553_s10  ;;  %1246 = vrot.lane.b32.xlu1 %v871_v29, %s1552_s9 }
 0x173   : > { %1301 = vrot.lane.b32.xlu2 %v871_v29, %s1553_s10 }
 0x17b   : > { %1248 = vrot.lane.b32.xlu2 %v872_v32, %s1552_s9 }
 0x1ad   : > { %v883_v33 = vpop.permute.xlu2 %882 }
 0x1b5   : > { %v982_v34 = vpop.permute.xlu2 %981 }
 0x1bd   : > { %v1035_v41 = vpop.permute.xlu2 %1034 }
 0x1c4   : > { %v885_v39 = vpop.permute.xlu0 %884  ;;  %v980_v40 = vpop.permute.xlu1 %979 }
 0x1c5   : > { %v886_v42 = vsel %vm286_vm4, %v883_v33, %v885_v39  ;;  %v887_v43 = vsel %vm286_vm4, %v885_v39, %v883_v33  ;;  %v983_v44 = vsel %vm404_vm3, %v980_v40, %v982_v34  ;;  %v984_v45 = vsel %vm404_vm3, %v982_v34, %v980_v40  ;;  %v1194_v57 = vpop.permute.xlu2 %1193 }
 0x1c6   : > { %v888_v46 = vmul.f32 %v887_v43, %v289_v36  ;;  %v889_v47 = vmul.f32 %v886_v42, %v290_v35  ;;  %v985_v48 = vmul.f32 %v984_v45, %v407_v37  ;;  %v986_v51 = vmul.f32 %v983_v44, %v408_v38  ;;  %v1356_v35 = vld [vmem:[%s1939_s4] sm:$0xf] }
 0x1c7   : > { %1359 = vperm.xlu0 %1535, %v1356_v35  }
 0x1c8   : > { %911 = vmatpush.msra.mxu2 %v888_v46  ;;  %931 = vmatpush.msra.mxu3 %v889_v47 }
 0x1c9   : > { %1488 = vmatmul.msk.f32.vlgmr.msra.gmra.mxu2 %vm892_vm10, %v1487_v52  ;;  %1489 = vmatmul.msk.f32.vlgmr.msra.gmra.mxu3 %vm892_vm10, %v1487_v52 }
 0x1ca   : > { %1007 = vmatpush.msrb.mxu2 %v985_v48  ;;  %1027 = vmatpush.msrb.mxu3 %v986_v51 }
 0x1cc   : > { %1109 = vmatpush.msra.mxu2 %v871_v29  ;;  %1129 = vmatpush.msra.mxu3 %v872_v32  ;;  %v874_v36 = vpop.permute.xlu0 %873  ;;  %v876_v37 = vpop.permute.xlu1 %875  ;;  %v1507_v32 = vld [vmem:[%s1938_s3 + $0x1c] sm:$0xf] }
 0x1cd   : > { %v877_v38 = vsel %vm269_vm0, %v874_v36, %v876_v37  ;;  %v878_v53 = vsel %vm269_vm0, %v876_v37, %v874_v36 }
 0x1ce   : > { %v879_v54 = vmul.f32 %v878_v53, %v272_v26  ;;  %v880_v55 = vmul.f32 %v877_v38, %v273_v25 }
 0x1d0   : > { %954 = vmatpush.msrb.mxu0 %v879_v54  ;;  %974 = vmatpush.msrb.mxu1 %v880_v55 }
 0x1d1   : > { %1490 = vmatmul.msk.f32.vlgmr.msrb.gmra.mxu0 %vm892_vm10, %v881_v56  ;;  %1491 = vmatmul.msk.f32.vlgmr.msrb.gmra.mxu1 %vm892_vm10, %v881_v56 }
 0x1d2   : > { %1493 = vmatmul.msk.f32.vlgmr.msrb.gmra.mxu2 %vm892_vm10, %v1492_v58  ;;  %1494 = vmatmul.msk.f32.vlgmr.msrb.gmra.mxu3 %vm892_vm10, %v1492_v58 }
 0x1d4   : > { %v1037_v25 = vpop.permute.xlu0 %1036  ;;  %v1192_v26 = vpop.permute.xlu1 %1191 }
 0x1d5   : > { %v1038_v59 = vsel %vm473_vm5, %v1035_v41, %v1037_v25  ;;  %v1039_v60 = vsel %vm473_vm5, %v1037_v25, %v1035_v41  ;;  %v1195_v61 = vsel %vm665_vm7, %v1192_v26, %v1194_v57  ;;  %v1196_v0 = vsel %vm665_vm7, %v1194_v57, %v1192_v26 }
 0x1d6   : > { %v1040_v1 = vmul.f32 %v1039_v60, %v476_v49  ;;  %v1041_v2 = vmul.f32 %v1038_v59, %v477_v50  ;;  %v1197_v3 = vmul.f32 %v1195_v61, %v668_v8  ;;  %v1198_v4 = vmul.f32 %v1196_v0, %v669_v9  ;;  %v1302_v49 = vpop.permute.xlu2 %1301  ;;  %v1365_v0 = vld.sshfl [vmem:[#allocation1] sm:$0xff pattern:$0x75316420] }
 0x1d8   : > { %1062 = vmatpush.msra.mxu0 %v1040_v1  ;;  %1082 = vmatpush.msra.mxu1 %v1041_v2  ;;  %v1366_v1 = vld.sshfl [vmem:[#allocation1 + $0x8] sm:$0xff pattern:$0x75316420] }
 0x1d9   : > { %1219 = vmatpush.msrb.mxu2 %v1197_v3  ;;  %1239 = vmatpush.msrb.mxu3 %v1198_v4 }
 0x1da   : > { %1496 = vmatmul.msk.f32.vlgmr.msra.gmra.mxu0 %vm892_vm10, %v1495_v5  ;;  %1497 = vmatmul.msk.f32.vlgmr.msra.gmra.mxu1 %vm892_vm10, %v1495_v5 }
 0x1db   : > { %1499 = vmatmul.msk.f32.vlgmr.msra.gmra.mxu2 %vm892_vm10, %v1498_v6  ;;  %1500 = vmatmul.msk.f32.vlgmr.msra.gmra.mxu3 %vm892_vm10, %v1498_v6 }
 0x1dc   : > { %v1137_v50 = vpop.permute.xlu0 %1136  ;;  %v1139_v8 = vpop.permute.xlu1 %1138 }
 0x1dd   : > { %v1140_v9 = vsel %vm596_vm6, %v1137_v50, %v1139_v8  ;;  %v1141_v7 = vsel %vm596_vm6, %v1139_v8, %v1137_v50 }
 0x1de   : > { %v1142_v10 = vmul.f32 %v1140_v9, %v599_v62  ;;  %v1143_v11 = vmul.f32 %v1141_v7, %v600_v63  ;;  %v1249_v14 = vpop.permute.xlu2 %1248 }
 0x1e0   : > { %1164 = vmatpush.msrb.mxu0 %v1142_v10  ;;  %1184 = vmatpush.msrb.mxu1 %v1143_v11 }
 0x1e2   : > { %1502 = vmatmul.msk.f32.vlgmr.msrb.gmra.mxu0 %vm892_vm10, %v1501_v12  ;;  %1503 = vmatmul.msk.f32.vlgmr.msrb.gmra.mxu1 %vm892_vm10, %v1501_v12 }
 0x1e3   : > { %1505 = vmatmul.msk.f32.vlgmr.msrb.gmra.mxu2 %vm892_vm10, %v1504_v13  ;;  %1506 = vmatmul.msk.f32.vlgmr.msrb.gmra.mxu3 %vm892_vm10, %v1504_v13 }
 0x1e4   : > { %v1304_v62 = vpop.permute.xlu0 %1303  ;;  %v1247_v63 = vpop.permute.xlu1 %1246 }
 0x1e5   : > { %v1305_v15 = vsel %vm803_vm9, %v1302_v49, %v1304_v62  ;;  %v1306_v18 = vsel %vm803_vm9, %v1304_v62, %v1302_v49  ;;  %v1250_v19 = vsel %vm734_vm8, %v1247_v63, %v1249_v14  ;;  %v1251_v20 = vsel %vm734_vm8, %v1249_v14, %v1247_v63 }
 0x1e6   : > { %v1307_v22 = vmul.f32 %v1780_v30, %v1305_v15  ;;  %v1308_v27 = vmul.f32 %v1785_v31, %v1306_v18  ;;  %v1252_v28 = vmul.f32 %v1250_v19, %v737_v16  ;;  %v1253_v29 = vmul.f32 %v1251_v20, %v738_v17 }
 0x1e8   : > { %1274 = vmatpush.msra.mxu0 %v1252_v28  ;;  %1294 = vmatpush.msra.mxu1 %v1253_v29 }
 0x1e9   : > { %1329 = vmatpush.msra.mxu2 %v1307_v22  ;;  %1349 = vmatpush.msra.mxu3 %v1308_v27 }
 0x1ea   : > { %1508 = vmatmul.msk.f32.vlgmr.msra.gmra.mxu0 %vm892_vm10, %v1507_v32  ;;  %1509 = vmatmul.msk.f32.vlgmr.msra.gmra.mxu1 %vm892_vm10, %v1507_v32 }
 0x1eb   : > { %1511 = vmatmul.msk.f32.vlgmr.msra.gmra.mxu2 %vm892_vm10, %v1510_v21  ;;  %1512 = vmatmul.msk.f32.vlgmr.msra.gmra.mxu3 %vm892_vm10, %v1510_v21 }
 0x239   : > { %v1360_v25 = vpop.permute.xlu0 %1359 }
 0x24c   : > { %v913_v23 = vpop.f32.mrf.mxu2  ;;  %v933_v24 = vpop.f32.mrf.mxu3 }
 0x24e   : > { %v956_v16 = vpop.f32.mrf.mxu0  ;;  %v976_v17 = vpop.f32.mrf.mxu1 }
 0x24f   : > { %v957_v39 = vadd.f32 %v956_v16, %v913_v23  ;;  %v977_v40 = vadd.f32 %v976_v17, %v933_v24 }
 0x255   : > { %v1009_v30 = vpop.f32.mrf.mxu2  ;;  %v1029_v31 = vpop.f32.mrf.mxu3 }
 0x256   : > { %v1032_v41 = vadd.f32 %v1009_v30, %v957_v39  ;;  %v1033_v42 = vadd.f32 %v1029_v31, %v977_v40 }
 0x257   : > { %v1064_v33 = vpop.f32.mrf.mxu0  ;;  %v1084_v34 = vpop.f32.mrf.mxu1 }
 0x258   : > { %v1087_v47 = vadd.f32 %v1064_v33, %v1032_v41  ;;  %v1088_v48 = vadd.f32 %v1084_v34, %v1033_v42 }
 0x25e   : > { %v1111_v43 = vpop.f32.mrf.mxu2  ;;  %v1131_v44 = vpop.f32.mrf.mxu3 }
 0x25f   : > { %v1166_v45 = vpop.f32.mrf.mxu0  ;;  %v1186_v46 = vpop.f32.mrf.mxu1  ;;  %v1134_v51 = vadd.f32 %v1111_v43, %v1087_v47  ;;  %v1135_v52 = vadd.f32 %v1131_v44, %v1088_v48 }
 0x261   : > { %v1189_v37 = vadd.f32 %v1166_v45, %v1134_v51  ;;  %v1190_v38 = vadd.f32 %v1186_v46, %v1135_v52 }
 0x266   : > { %v1221_v35 = vpop.f32.mrf.mxu2  ;;  %v1241_v36 = vpop.f32.mrf.mxu3 }
 0x267   : > { %v1244_v53 = vadd.f32 %v1221_v35, %v1189_v37  ;;  %v1245_v54 = vadd.f32 %v1241_v36, %v1190_v38  ;;  %v1276_v55 = vpop.f32.mrf.mxu0  ;;  %v1296_v56 = vpop.f32.mrf.mxu1 }
 0x269   : > { %v1299_v57 = vadd.f32 %v1276_v55, %v1244_v53  ;;  %v1300_v58 = vadd.f32 %v1296_v56, %v1245_v54 }
 0x26e   : > { %v1331_v26 = vpop.f32.mrf.mxu2  ;;  %v1351_v59 = vpop.f32.mrf.mxu3 }
 0x26f   : > { %v1354_v60 = vadd.f32 %v1331_v26, %v1299_v57  ;;  %v1355_v61 = vadd.f32 %v1351_v59, %v1300_v58 }
 0x271   : > { %v1362_v2 = vadd.f32 %v1360_v25, %v1354_v60  ;;  %v1363_v3 = vadd.f32 %v1360_v25, %v1355_v61 }
 0x273   : > { %v1369_v4 = vadd.f32 %v1365_v0, %v1362_v2  ;;  %v1370_v5 = vadd.f32 %v1366_v1, %v1363_v3 }
 0x275   : > { %v1372_v6 = vmax.f32 %v1370_v5, 0.0  ;;  %v1371_v49 = vmax.f32 %v1369_v4, 0.0 }
 0x277   : > { %v1375_v50 = vrot.slane %v1372_v6, 4 }
 0x279   : > { %v1376_v8 = vsel %vm299_vm1, %v1371_v49, %v1375_v50 }
 0x27a   : > { %1378 = vst [vmem:[%s251_s28] sm:$0xff] %v1376_v8 }
 0x27b PF: > { %s16_s21 = sadd.s32 1, %s1544_s21  }
 0x27c   : > { %p13_p4 = scmp.ge.s32.totalorder %s16_s21, 4  }
 0x27e   :  { %15 = sbr.rel (!%p13_p4) target bundleno = 1 (0x1), region = 90 }

</bundles_post_ra>
